<compile_context>
chip_gen: v5e
topology: v5e:2x2
jax: 0.10.0
libtpu: 0.0.40
codegen_flags: <defaults>
</compile_context>

<pallas_src>
import functools

import jax
import jax.numpy as jnp
from jax.experimental import pallas as pl
from jax.experimental.pallas import tpu as pltpu

EPS = 1e-6  # matches torch.nn.functional.pairwise_distance default eps


def _contrastive_kernel(x1_ref, x2_ref, lbl_ref, out_ref, sq_acc, *,
                        total_rows, feat_dim, margin, mask_rows, mask_cols):
    i = pl.program_id(0)          # row-tile index   ("parallel")
    d = pl.program_id(1)          # feature-chunk index ("arbitrary", innermost)

    @pl.when(d == 0)
    def _():
        sq_acc[...] = jnp.zeros_like(sq_acc)

    # Load in native dtype (possibly bf16), widen to f32 for the math.
    x1 = x1_ref[...].astype(jnp.float32)            # (TB, TD)
    x2 = x2_ref[...].astype(jnp.float32)            # (TB, TD)
    diff = x1 - x2 + EPS                            # elementwise eps, as in torch
    sqd = diff * diff
    if mask_cols:
        # Padded feature columns of the last chunk must not contribute.
        # Select (don't multiply) so garbage NaN/Inf is dropped, not propagated.
        td = sqd.shape[1]
        col_ids = d * td + jax.lax.broadcasted_iota(jnp.int32, sqd.shape, 1)
        sqd = jnp.where(col_ids < feat_dim, sqd, 0.0)
    sq_acc[...] += jnp.sum(sqd, axis=-1, keepdims=True)   # partial d^2

    @pl.when(d == pl.num_programs(1) - 1)
    def _():
        lbl = lbl_ref[...].astype(jnp.float32)      # (TB, 1)
        sq = sq_acc[...]                            # == d^2
        dist = jnp.sqrt(sq)
        hinge = jnp.maximum(margin - dist, 0.0)
        loss = (1.0 - lbl) * sq + lbl * (hinge * hinge)
        if mask_rows:
            # Padded batch rows of the remainder tile must not contribute.
            tb = loss.shape[0]
            row_ids = i * tb + jax.lax.broadcasted_iota(jnp.int32, (tb, 1), 0)
            loss = jnp.where(row_ids < total_rows, loss, 0.0)
        # Lane-dense (1, 8, 128) output block; wrapper reads [:, 0, 0].
        out_ref[...] = jnp.full(out_ref.shape, jnp.sum(loss), dtype=jnp.float32)


def _tpu_vmem_and_cores():
    """Best-effort (vmem_bytes, has_two_tensorcores) for the local TPU."""
    kind = ""
    try:
        kind = jax.devices()[0].device_kind.lower()
    except Exception:
        pass
    vmem = None
    try:
        vmem = int(pltpu.get_tpu_info().vmem_capacity_bytes)
    except Exception:
        vmem = None
    if vmem is None:
        # v5e/v6e have 128 MiB VMEM; v7x (and unknown -> conservative) 64 MiB.
        vmem = (128 << 20) if (kind and "v7" not in kind) else (64 << 20)
    two_tc = ("v7" in kind) or vmem <= (64 << 20)
    return vmem, two_tc


def contrastive_loss(output1, output2, label, margin=2.0,
                     tile_rows=None, tile_feats=None):
    """output1, output2: (B, D) float32 or bfloat16; label: (B,). Returns scalar loss."""
    B, D = output1.shape
    assert output2.shape == (B, D)
    itemsize = jnp.dtype(output1.dtype).itemsize
    label2d = label.reshape(B, 1).astype(jnp.float32)
    row_align = 16 if itemsize < 4 else 8

    # --- generation-aware VMEM budgeting -------------------------------------
    vmem_bytes, two_tc = _tpu_vmem_and_cores()
    if vmem_bytes >= (96 << 20):        # v5e / v6e: 128 MiB physical VMEM
        tile_budget = 8 << 20           # per input, per pipeline buffer
        vmem_limit = 64 << 20
    else:                               # v7x (or unknown): 64 MiB VMEM per TC
        tile_budget = 4 << 20           # 2 inputs x 2 buffers ~= 16 MiB total
        vmem_limit = 48 << 20

    MAX_TILE_ROWS = 2048

    # --- feature (lane) tiling: only split D when even a minimal row tile
    # would blow the per-buffer budget (very wide embeddings). -----------------
    if tile_feats is not None:
        TD = int(tile_feats)
        TD = D if TD >= D else max(128, (TD // 128) * 128)
    elif row_align * D * itemsize <= tile_budget:
        TD = D
    else:
        TD = max(128, (tile_budget // (row_align * itemsize)) // 128 * 128)
        if TD >= D:
            TD = D
    num_feat_tiles = pl.cdiv(D, TD)

    # --- batch (sublane) tiling: biggest aligned tile that fits the budget. ---
    if tile_rows is not None:
        tb = max(row_align, (int(tile_rows) // row_align) * row_align)
    else:
        rows_fit = max(row_align, tile_budget // max(TD * itemsize, 1))
        tb = max(row_align, min(MAX_TILE_ROWS, (rows_fit // row_align) * row_align))
    TB = B if B <= tb else tb

    # v7x has 2 TensorCores: make sure the "parallel" row axis has >= 2 tiles.
    if two_tc and pl.cdiv(B, TB) == 1 and B >= 2 * row_align:
        half = -(-B // 2)
        TB = ((half + row_align - 1) // row_align) * row_align
    num_row_tiles = pl.cdiv(B, TB)

    kernel = functools.partial(
        _contrastive_kernel,
        total_rows=B,
        feat_dim=D,
        margin=float(margin),
        mask_rows=(num_row_tiles * TB != B),
        mask_cols=(num_feat_tiles * TD != D),
    )

    out = pl.pallas_call(
        kernel,
        out_shape=jax.ShapeDtypeStruct((num_row_tiles, 8, 128), jnp.float32),
        grid=(num_row_tiles, num_feat_tiles),
        in_specs=[
            pl.BlockSpec((TB, TD), lambda i, d: (i, d)),
            pl.BlockSpec((TB, TD), lambda i, d: (i, d)),
            pl.BlockSpec((TB, 1), lambda i, d: (i, 0)),
        ],
        out_specs=pl.BlockSpec((1, 8, 128), lambda i, d: (i, 0, 0)),
        scratch_shapes=[pltpu.VMEM((TB, 1), jnp.float32)],
        compiler_params=pltpu.CompilerParams(
            dimension_semantics=("parallel", "arbitrary"),
            vmem_limit_bytes=vmem_limit,
        ),
        cost_estimate=pl.CostEstimate(
            flops=3 * B * D + 8 * B,
            transcendentals=B,                               # one sqrt per row
            bytes_accessed=2 * B * D * itemsize + B * 4
            + num_row_tiles * 8 * 128 * 4,
        ),
    )(output1, output2, label2d)

    partials = out[:, 0, 0]                  # (num_row_tiles,)
    return jnp.sum(partials) / B             # divide by the true B


def _reference(output1, output2, label, margin=2.0):
    diff = output1.astype(jnp.float32) - output2.astype(jnp.float32) + EPS
    d = jnp.sqrt(jnp.sum(diff * diff, axis=-1))
    return jnp.mean((1.0 - label) * d**2 + label * jnp.clip(margin - d, 0.0) ** 2)


if __name__ == "__main__":
    key = jax.random.PRNGKey(0)
    k1, k2, k3 = jax.random.split(key, 3)

    # 1) Small case: single (or v7x: two) row tile(s), D whole.
    B, D = 8, 32
    out1 = jax.random.normal(k1, (B, D), dtype=jnp.float32)
    out2 = jax.random.normal(k2, (B, D), dtype=jnp.float32)
    label = jax.random.bernoulli(k3, 0.5, (B,)).astype(jnp.float32)
    loss = contrastive_loss(out1, out2, label)
    jax.block_until_ready(loss)
    ref = _reference(out1, out2, label)
    assert jnp.allclose(loss, ref, rtol=1e-5, atol=1e-5), (loss, ref)

    # 2) Multi-row-tile case with a remainder tile (B=20, TB=8 -> 3 tiles).
    B2, D2 = 20, 32
    kk1, kk2, kk3 = jax.random.split(jax.random.PRNGKey(1), 3)
    a1 = jax.random.normal(kk1, (B2, D2), dtype=jnp.float32)
    a2 = jax.random.normal(kk2, (B2, D2), dtype=jnp.float32)
    lbl2 = jax.random.bernoulli(kk3, 0.5, (B2,)).astype(jnp.float32)
    loss2 = contrastive_loss(a1, a2, lbl2, tile_rows=8)
    jax.block_until_ready(loss2)
    ref2 = _reference(a1, a2, lbl2)
    assert jnp.allclose(loss2, ref2, rtol=1e-5, atol=1e-5), (loss2, ref2)

    # 3) bf16 embeddings accepted directly (widened in-kernel), remainder rows.
    b1 = a1.astype(jnp.bfloat16)
    b2 = a2.astype(jnp.bfloat16)
    loss3 = contrastive_loss(b1, b2, lbl2, tile_rows=16)
    jax.block_until_ready(loss3)
    ref3 = _reference(b1, b2, lbl2)
    assert jnp.allclose(loss3, ref3, rtol=2e-2, atol=2e-2), (loss3, ref3)

    # 4) Wide-D fallback path: feature dim split over the "arbitrary" grid axis
    #    with the (TB, 1) accumulator scratch (forced via tile_feats).
    B4, D4 = 16, 256
    j1, j2, j3 = jax.random.split(jax.random.PRNGKey(2), 3)
    c1 = jax.random.normal(j1, (B4, D4), dtype=jnp.float32)
    c2 = jax.random.normal(j2, (B4, D4), dtype=jnp.float32)
    lbl4 = jax.random.bernoulli(j3, 0.5, (B4,)).astype(jnp.float32)
    loss4 = contrastive_loss(c1, c2, lbl4, tile_feats=128)
    jax.block_until_ready(loss4)
    ref4 = _reference(c1, c2, lbl4)
    assert jnp.allclose(loss4, ref4, rtol=1e-5, atol=1e-5), (loss4, ref4)

    print("KERNEL_OK")
</pallas_src>

<mosaic_0001>
module attributes {stable_mosaic.version = 11 : i64} {
  func.func @_contrastive_kernel(%arg0: i32, %arg1: i32, %arg2: memref<8x32xf32, #tpu.memory_space<vmem>>, %arg3: memref<8x32xf32, #tpu.memory_space<vmem>>, %arg4: memref<8x1xf32, #tpu.memory_space<vmem>>, %arg5: memref<1x8x128xf32, #tpu.memory_space<vmem>>, %arg6: memref<8x1xf32, #tpu.memory_space<vmem>>) attributes {dimension_semantics = [#tpu.dimension_semantics<parallel>, #tpu.dimension_semantics<arbitrary>], iteration_bounds = array<i64: 1, 1>, scalar_prefetch = 0 : i64, scratch_operands = 1 : i64, tpu.core_type = #tpu.core_type<tc>, window_params = [{transform_indices = @transform_0, window_bounds = array<i64: 8, 32>}, {transform_indices = @transform_1, window_bounds = array<i64: 8, 32>}, {transform_indices = @transform_2, window_bounds = array<i64: 8, 1>}, {transform_indices = @transform_3, window_bounds = array<i64: 1, 8, 128>}]} {
    %c0_i32 = arith.constant 0 : i32
    %0 = arith.cmpi eq, %arg1, %c0_i32 : i32
    %1 = arith.extui %0 : i1 to i32
    %c0_i32_0 = arith.constant 0 : i32
    %2 = arith.cmpi ne, %1, %c0_i32_0 : i32
    scf.if %2 {
      %cst_11 = arith.constant 0.000000e+00 : f32
      %17 = vector.broadcast %cst_11 : f32 to vector<8x1xf32>
      %c0_12 = arith.constant 0 : index
      %c0_13 = arith.constant 0 : index
      %18 = vector.load %arg6[%c0_12, %c0_13] : memref<8x1xf32, #tpu.memory_space<vmem>>, vector<8x1xf32>
      tpu.vector_store %arg6[%c0_12, %c0_13], %17 {strides = array<i32>} : memref<8x1xf32, #tpu.memory_space<vmem>>, vector<8x1xf32>,
    } else {
    }
    %c0 = arith.constant 0 : index
    %c0_1 = arith.constant 0 : index
    %3 = vector.load %arg2[%c0, %c0_1] : memref<8x32xf32, #tpu.memory_space<vmem>>, vector<8x32xf32>
    %c0_2 = arith.constant 0 : index
    %c0_3 = arith.constant 0 : index
    %4 = vector.load %arg3[%c0_2, %c0_3] : memref<8x32xf32, #tpu.memory_space<vmem>>, vector<8x32xf32>
    %5 = arith.subf %3, %4 : vector<8x32xf32>
    %cst = arith.constant 9.99999997E-7 : f32
    %6 = vector.broadcast %cst : f32 to vector<8x32xf32>
    %7 = arith.addf %5, %6 : vector<8x32xf32>
    %8 = arith.mulf %7, %7 : vector<8x32xf32>
    %c0_4 = arith.constant 0 : index
    %c0_5 = arith.constant 0 : index
    %9 = vector.load %arg6[%c0_4, %c0_5] : memref<8x1xf32, #tpu.memory_space<vmem>>, vector<8x1xf32>
    %cst_6 = arith.constant dense<0.000000e+00> : vector<8xf32>
    %10 = vector.multi_reduction <add>, %8, %cst_6 [1] : vector<8x32xf32> to vector<8xf32>
    %11 = vector.shape_cast %10 : vector<8xf32> to vector<8x1xf32>
    %12 = arith.addf %9, %11 : vector<8x1xf32>
    %c0_7 = arith.constant 0 : index
    %c0_8 = arith.constant 0 : index
    %13 = vector.load %arg6[%c0_7, %c0_8] : memref<8x1xf32, #tpu.memory_space<vmem>>, vector<8x1xf32>
    tpu.vector_store %arg6[%c0_7, %c0_8], %12 {strides = array<i32>} : memref<8x1xf32, #tpu.memory_space<vmem>>, vector<8x1xf32>,
    %c0_i32_9 = arith.constant 0 : i32
    %14 = arith.cmpi eq, %arg1, %c0_i32_9 : i32
    %15 = arith.extui %14 : i1 to i32
    %c0_i32_10 = arith.constant 0 : i32
    %16 = arith.cmpi ne, %15, %c0_i32_10 : i32
    scf.if %16 {
      %c0_11 = arith.constant 0 : index
      %c0_12 = arith.constant 0 : index
      %17 = vector.load %arg4[%c0_11, %c0_12] : memref<8x1xf32, #tpu.memory_space<vmem>>, vector<8x1xf32>
      %c0_13 = arith.constant 0 : index
      %c0_14 = arith.constant 0 : index
      %18 = vector.load %arg6[%c0_13, %c0_14] : memref<8x1xf32, #tpu.memory_space<vmem>>, vector<8x1xf32>
      %19 = math.sqrt %18 : vector<8x1xf32>
      %cst_15 = arith.constant 2.000000e+00 : f32
      %20 = vector.broadcast %cst_15 : f32 to vector<8x1xf32>
      %21 = arith.subf %20, %19 : vector<8x1xf32>
      %cst_16 = arith.constant 0.000000e+00 : f32
      %22 = vector.broadcast %cst_16 : f32 to vector<8x1xf32>
      %23 = arith.maximumf %21, %22 : vector<8x1xf32>
      %cst_17 = arith.constant 1.000000e+00 : f32
      %24 = vector.broadcast %cst_17 : f32 to vector<8x1xf32>
      %25 = arith.subf %24, %17 : vector<8x1xf32>
      %26 = arith.mulf %25, %18 : vector<8x1xf32>
      %27 = arith.mulf %23, %23 : vector<8x1xf32>
      %28 = arith.mulf %17, %27 : vector<8x1xf32>
      %29 = arith.addf %26, %28 : vector<8x1xf32>
      %30 = vector.shape_cast %29 : vector<8x1xf32> to vector<1x8x1xf32>
      %cst_18 = arith.constant dense<0.000000e+00> : vector<1xf32>
      %31 = vector.multi_reduction <add>, %30, %cst_18 [1, 2] : vector<1x8x1xf32> to vector<1xf32>
      %32 = vector.shape_cast %31 : vector<1xf32> to vector<1x1x1xf32>
      %33 = vector.extract %32[0, 0, 0] : f32 from vector<1x1x1xf32>
      %34 = vector.broadcast %33 : f32 to vector<1x8x128xf32>
      %c0_19 = arith.constant 0 : index
      %c0_20 = arith.constant 0 : index
      %c0_21 = arith.constant 0 : index
      %35 = vector.load %arg5[%c0_19, %c0_20, %c0_21] : memref<1x8x128xf32, #tpu.memory_space<vmem>>, vector<1x8x128xf32>
      tpu.vector_store %arg5[%c0_19, %c0_20, %c0_21], %34 {strides = array<i32>} : memref<1x8x128xf32, #tpu.memory_space<vmem>>, vector<1x8x128xf32>,
    } else {
    }
    return
  }
  func.func @transform_0(%arg0: i32, %arg1: i32) -> (i32, i32) {
    %c0_i32 = arith.constant 0 : i32
    return %arg0, %arg1 : i32, i32
  }
  func.func @transform_1(%arg0: i32, %arg1: i32) -> (i32, i32) {
    %c0_i32 = arith.constant 0 : i32
    return %arg0, %arg1 : i32, i32
  }
  func.func @transform_2(%arg0: i32, %arg1: i32) -> (i32, i32) {
    %c0_i32 = arith.constant 0 : i32
    %c0_i32_0 = arith.constant 0 : i32
    return %arg0, %c0_i32 : i32, i32
  }
  func.func @transform_3(%arg0: i32, %arg1: i32) -> (i32, i32, i32) {
    %c0_i32 = arith.constant 0 : i32
    %c0_i32_0 = arith.constant 0 : i32
    %c0_i32_1 = arith.constant 0 : i32
    return %arg0, %c0_i32, %c0_i32_0 : i32, i32, i32
  }
}

</mosaic_0001>

<bundles_post_ra>
// kernel: tpu_custom_call.1
= control target key start
LH: loop header
LB: loop body
LE: loop exit
PB: predicated region body
PF: predicated region fallthrough
CT: control target
= control target key end

     0   :  { %8 = vsyncpa [#allocation4], 0  ;;  %s198_s0 = inlined_call_operand.vmem [shape: f32[8,32], index: 0, kind: input, shape index: {}]   ;;  %s199_s1 = inlined_call_operand.hbm [shape: f32[8,32], index: 1, kind: input, shape index: {}]   ;;  %s200_s2 = inlined_call_operand.vmem [shape: f32[8,1], index: 2, kind: input, shape index: {}]   ;;  %s201_s3 = inlined_call_operand.hbm [shape: f32[1,8,128], index: 3, kind: output, shape index: {}]  }
   0x1   :  { %9 = vsyncpa [#allocation5], 0  ;;  %s17_s14 = sshll.u32 %s199_s1, 4  ;;  %s160_s15 = smov [#allocation3]   ;;  %s18_s14 = int_to_ptr.hbm [resolvable:$true] %s17_s14 }
   0x2   :  { %s19_s16 = sshll.u32 %s160_s15, 4  ;;  %s20_s16 = int_to_ptr.vmem [resolvable:$true] %s19_s16 }
   0x3   :  { %22 = dma.hbm_to_vmem [thread:$0]  %s18_s14, 128, %s20_s16, [#allocation4]  }
   0x4   :  { %156 = dma.done.wait [#allocation4], 128  }
   0x5   :  { %157 = vsyncadd [#allocation4], 4294967168  ;;  %vm33_vm0 = vcmask 7168   ;;  %v161_v0 = vmov 0.0   ;;  %v35_v1 = vld [vmem:[%s198_s0] sm:$0xff]  ;;  %v36_v2 = vld [vmem:[#allocation3] sm:$0xff] }
   0x6   :  { %34 = vst.msk [vmem:[#allocation2] sm:$0xff] %vm33_vm0, %v161_v0  ;;  %v37_v3 = vsub.f32 %v35_v1, %v36_v2  ;;  %vm41_vm1 = vcmask 261120   ;;  %v51_v20 = vld [vmem:[%s200_s2] sm:$0xff]  ;;  %s162_s2 = smov [#allocation6]   ;;  %s91_s22 = sshll.u32 %s201_s3, 4  ;;  %s92_s22 = int_to_ptr.hbm [resolvable:$true] %s91_s22 }
   0x7   :  { %v67_v24 = vsub.f32 1.0, %v51_v20  ;;  %s89_s19 = sshll.u32 %s162_s2, 4  ;;  %s90_s19 = int_to_ptr.vmem [resolvable:$true] %s89_s19 }
   0x8   :  { %v38_v4 = vadd.f32 1e-06, %v37_v3 }
   0xa   :  { %v39_v5 = vmul.f32 %v38_v4, %v38_v4 }
   0xc   :  { %v42_v6 = vsel %vm41_vm1, %v39_v5, 0.0 }
   0xd   :  { %43 = vadd.xlane.f32.xlu0 %v42_v6  ;;  %v40_v7 = vld [vmem:[#allocation2] sm:$0xff] }
  0x80   :  { %v44_v8 = vpop.xlane.xlu0 %43 }
  0x81   :  { %v45_v9 = vadd.f32 %v44_v8, %v40_v7 }
  0x83   :  { %47 = vst.msk [vmem:[#allocation2] sm:$0xff] %vm33_vm0, %v45_v9 }
  0x8a   :  { %v52_v10 = vld [vmem:[#allocation2] sm:$0xff] }
  0x8b   :  { %106 = vrsqrt.f32 %v52_v10  ;;  %vm60_vm2 = vcmp.eq.f32.partialorder %v52_v10, inf  ;;  %v63_v18 = vand.u32 2147483648, %v52_v10  ;;  %vm62_vm3 = vcmp.eq.f32.partialorder %v52_v10, 0.0 }
  0x8c   :  { %v68_v26 = vmul.f32 %v67_v24, %v52_v10 }
  0x91   :  { %v107_v11 = vpop.eup %106 }
  0x92   :  { %v54_v12 = vmul.f32 %v107_v11, %v52_v10 }
  0x94   :  { %v55_v13 = vmul.f32 %v107_v11, %v54_v12 }
  0x96   :  { %v56_v14 = vmul.f32 0.5, %v55_v13 }
  0x98   :  { %v57_v15 = vsub.f32 1.5, %v56_v14 }
  0x9a   :  { %v58_v16 = vmul.f32 %v107_v11, %v57_v15 }
  0x9c   :  { %v59_v17 = vmul.f32 %v58_v16, %v52_v10 }
  0x9e   :  { %v61_v19 = vsel %vm60_vm2, %v52_v10, %v59_v17 }
  0x9f   :  { %v64_v21 = vsel %vm62_vm3, %v63_v18, %v61_v19 }
  0xa0   :  { %v65_v22 = vsub.f32 2.0, %v64_v21 }
  0xa2   :  { %v66_v23 = vmax.f32 %v65_v22, 0.0 }
  0xa4   :  { %v69_v25 = vmul.f32 %v66_v23, %v66_v23 }
  0xa6   :  { %v70_v27 = vmul.f32 %v69_v25, %v51_v20 }
  0xa8   :  { %v71_v28 = vadd.f32 %v70_v27, %v68_v26 }
  0xaa   :  { %v72_v29 = vsel %vm33_vm0, %v71_v28, 0.0 }
  0xab   :  { %73 = vadd.xlane.f32.xlu0 %v72_v29 }
 0x11e   :  { %v74_v30 = vpop.xlane.xlu0 %73 }
 0x11f   :  { %v75_v31 = vrot.slane %v74_v30, 4 }
 0x121   :  { %v76_v32 = vadd.f32 %v75_v31, %v74_v30 }
 0x123   :  { %v77_v33 = vrot.slane %v76_v32, 2 }
 0x125   :  { %v78_v34 = vadd.f32 %v77_v33, %v76_v32 }
 0x127   :  { %v79_v35 = vrot.slane %v78_v34, 1 }
 0x129   :  { %v80_v36 = vadd.f32 %v79_v35, %v78_v34 }
 0x12b   :  { %101 = vpush %v80_v36 }
 0x15c   :  { %s102_s23 = spop %101 }
 0x15d   :  { %v82_v37 = vstv %s102_s23 }
 0x15e   :  { %83 = vst [vmem:[#allocation6] sm:$0xff] %v82_v37 }
 0x15f   :  { %94 = dma.vmem_to_hbm [thread:$0]  %s90_s19, 128, %s92_s22, [#allocation5]  }
 0x160   :  { %158 = dma.done.wait [#allocation5], 128  }
 0x161   :  { %159 = vsyncadd [#allocation5], 4294967168 }
 0x162   :  { %99 = vsyncpa [#allocation4], 1 }
 0x163   :  { %100 = vsyncpa [#allocation5], 1 }

</bundles_post_ra>
